<compile_context>
chip_gen: v5e
topology: v5e:2x2
jax: 0.10.0
libtpu: 0.0.40
codegen_flags: <defaults>
</compile_context>

<pallas_src>
import functools
import random

import jax
import jax.numpy as jnp
from jax.experimental import pallas as pl
from jax.experimental.pallas import tpu as pltpu


# --------------------------------------------------------------------------- #
# Pass 1: per-patch statistics                                                 #
# --------------------------------------------------------------------------- #
def _stats_kernel(x_ref, mu_ref, var_ref, *, num_w, pw, inv_n, inv_nm1):
    """x_ref: (1, Ct, 1, ph, W) strip.  Writes mu/var: (1, Ct, 1, 1, num_w)."""
    x = x_ref[...].astype(jnp.float32)
    for j in range(num_w):                                    # static, small
        xs = x[:, :, :, :, j * pw:(j + 1) * pw]               # (1, Ct, 1, ph, pw)
        # chained lane-then-sublane reductions (well-supported lowering path)
        s = jnp.sum(jnp.sum(xs, axis=4, keepdims=True), axis=3, keepdims=True)
        mu = s * inv_n                                        # (1, Ct, 1, 1, 1)
        d = xs - mu                                           # numerically-safe 2-pass var
        ss = jnp.sum(jnp.sum(d * d, axis=4, keepdims=True), axis=3, keepdims=True)
        var = ss * inv_nm1                                    # unbiased (torch.var default)
        mu_ref[:, :, :, :, j:j + 1] = mu
        var_ref[:, :, :, :, j:j + 1] = var


# --------------------------------------------------------------------------- #
# Pass 2: fused normalize + de-normalize (per-patch affine)                    #
# --------------------------------------------------------------------------- #
def _affine_kernel(x_ref, sc_ref, sh_ref, o_ref, *, num_w, pw):
    """out = x * scale + shift on a (1, Ct, 1, ph, W) strip."""
    x = x_ref[...].astype(jnp.float32)                        # (1, Ct, 1, ph, W)
    scv = sc_ref[...]                                         # (1, Ct, 1, 1, num_w) f32
    shv = sh_ref[...]
    ct = x.shape[1]
    row = (1, ct, 1, 1, pw)
    # Build full-width per-channel scale/shift rows, then one fused mul+add and
    # a single lane-dense store of the whole strip (no masked sub-W stores).
    sc_row = jnp.concatenate(
        [jnp.broadcast_to(scv[:, :, :, :, j:j + 1], row) for j in range(num_w)], axis=-1)
    sh_row = jnp.concatenate(
        [jnp.broadcast_to(shv[:, :, :, :, j:j + 1], row) for j in range(num_w)], axis=-1)
    o_ref[...] = (x * sc_row + sh_row).astype(o_ref.dtype)


# --------------------------------------------------------------------------- #
# Wrappers                                                                     #
# --------------------------------------------------------------------------- #
def _pick_c_tile(C, ph, W, itemsize):
    """Channel tile so the per-step VMEM footprint (double-buffered in+out strips
    plus padded stats blocks) stays well under scoped-VMEM defaults and v7x's
    64 MiB physical VMEM."""
    def footprint(ct):
        strip = ct * ph * W * itemsize            # one x / out block
        stats = ct * 8 * 128 * 4                  # (ct, 1, num_w) f32, (8,128)-padded
        return 2 * (2 * strip + 2 * stats)        # double-buffered
    ct = C
    while ct % 2 == 0 and ct > 8 and footprint(ct) > 24 * 1024 * 1024:
        ct //= 2
    return ct


_MOSAIC_PARAMS = pltpu.CompilerParams(
    dimension_semantics=("parallel", "parallel", "parallel"),
    vmem_limit_bytes=32 * 1024 * 1024,
)


def _cpss_patch_stats(x5, *, num_w, pw, c_tile):
    B, C, num_h, ph, W = x5.shape
    n = ph * pw
    kernel = functools.partial(
        _stats_kernel, num_w=num_w, pw=pw,
        inv_n=1.0 / n, inv_nm1=1.0 / max(n - 1, 1))           # guard ph*pw == 1
    stats = jax.ShapeDtypeStruct((B, C, num_h, 1, num_w), jnp.float32)
    x_spec = pl.BlockSpec((1, c_tile, 1, ph, W), lambda b, i, c: (b, c, i, 0, 0))
    s_spec = pl.BlockSpec((1, c_tile, 1, 1, num_w), lambda b, i, c: (b, c, i, 0, 0))
    return pl.pallas_call(
        kernel,
        out_shape=(stats, stats),
        grid=(B, num_h, C // c_tile),
        in_specs=[x_spec],
        out_specs=(s_spec, s_spec),
        compiler_params=_MOSAIC_PARAMS,
    )(x5)


def _cpss_apply_affine(x5, scale5, shift5, *, num_w, pw, c_tile):
    B, C, num_h, ph, W = x5.shape
    kernel = functools.partial(_affine_kernel, num_w=num_w, pw=pw)
    x_spec = pl.BlockSpec((1, c_tile, 1, ph, W), lambda b, i, c: (b, c, i, 0, 0))
    s_spec = pl.BlockSpec((1, c_tile, 1, 1, num_w), lambda b, i, c: (b, c, i, 0, 0))
    return pl.pallas_call(
        kernel,
        out_shape=jax.ShapeDtypeStruct(x5.shape, x5.dtype),
        grid=(B, num_h, C // c_tile),
        in_specs=[x_spec, s_spec, s_spec],
        out_specs=x_spec,
        compiler_params=_MOSAIC_PARAMS,
    )(x5, scale5, shift5)


@functools.partial(jax.jit, static_argnames=("num_h", "num_w", "eps"))
def _cpss_stylize(x, perm, *, num_h, num_w, eps):
    B, C, H, W = x.shape
    ph, pw = H // num_h, W // num_w
    N = num_h * num_w * B
    c_tile = _pick_c_tile(C, ph, W, x.dtype.itemsize)

    # Free view (contiguous split of H) -- no data movement, no transpose.
    x5 = x.reshape(B, C, num_h, ph, W)

    mu5, var5 = _cpss_patch_stats(x5, num_w=num_w, pw=pw, c_tile=c_tile)

    # ---- tiny (N*C) per-patch affine computation in plain JAX ----
    # Reorder to the PyTorch torch.cat ordering: row = (i*num_w + j)*B + b.
    def to_flat(a):                                # (B, C, num_h, 1, num_w) -> (N, C)
        return jnp.transpose(a[:, :, :, 0, :], (2, 3, 0, 1)).reshape(N, C)

    mu_all = to_flat(mu5)
    sig_all = jnp.sqrt(to_flat(var5) + eps)
    mu_mix = mu_all[perm]
    sig_mix = sig_all[perm]
    scale = sig_mix / sig_all                      # == sig_mix * rsqrt(var + eps)
    shift = mu_mix - mu_all * scale

    def to_5d(a):                                  # (N, C) -> (B, C, num_h, 1, num_w)
        a = jnp.transpose(a.reshape(num_h, num_w, B, C), (2, 3, 0, 1))
        return a[:, :, :, None, :].astype(jnp.float32)

    out5 = _cpss_apply_affine(x5, to_5d(scale), to_5d(shift),
                              num_w=num_w, pw=pw, c_tile=c_tile)
    return out5.reshape(B, C, H, W)


def cpss_forward(x, key, *, p=0.3, num_h=2, num_w=2, eps=1e-6, training=True):
    """JAX/Pallas equivalent of CPSS.forward (NCHW input, same semantics).

    The `random.random() > p` gate is taken on the host exactly like the PyTorch
    module (no device->host sync); `key` replaces torch.randperm.  The stylize
    path itself is fully jittable.
    """
    if not training:
        return x
    if random.random() > p:        # host-side probability gate
        return x
    B, C, H, W = x.shape
    assert H % num_h == 0 and W % num_w == 0, "H/W must be divisible by num_h/num_w"
    perm = jax.random.permutation(key, num_h * num_w * B).astype(jnp.int32)
    return _cpss_stylize(x, perm, num_h=num_h, num_w=num_w, eps=eps)


# --------------------------------------------------------------------------- #
# Pure-JAX reference (mirrors the PyTorch code) for the sanity check           #
# --------------------------------------------------------------------------- #
def _cpss_reference(x, perm, num_h, num_w, eps):
    B, C, H, W = x.shape
    ph, pw = H // num_h, W // num_w
    mus, sigs, normed = [], [], []
    for i in range(num_h):
        for j in range(num_w):
            xp = x[:, :, i * ph:(i + 1) * ph, j * pw:(j + 1) * pw]
            mu = jnp.mean(xp, axis=(2, 3), keepdims=True)
            var = jnp.var(xp, axis=(2, 3), keepdims=True, ddof=1)
            sig = jnp.sqrt(var + eps)
            mus.append(mu)
            sigs.append(sig)
            normed.append((xp - mu) / sig)
    mu_all = jnp.concatenate(mus, axis=0)
    sig_all = jnp.concatenate(sigs, axis=0)
    mu_mix, sig_mix = mu_all[perm], sig_all[perm]
    denormed = [normed[p] * sig_mix[p * B:(p + 1) * B] + mu_mix[p * B:(p + 1) * B]
                for p in range(len(normed))]
    rows = [jnp.concatenate(denormed[num_w * k:num_w * (k + 1)], axis=3)
            for k in range(num_h)]
    return jnp.concatenate(rows, axis=2)


if __name__ == "__main__":
    key = jax.random.PRNGKey(0)
    k_x, k_perm = jax.random.split(key)

    B, C, H, W = 2, 4, 16, 16
    num_h, num_w, eps = 2, 2, 1e-6
    x = jax.random.normal(k_x, (B, C, H, W), dtype=jnp.float32)

    # p=1.0 forces the stylization branch so the kernels actually run here.
    out = cpss_forward(x, k_perm, p=1.0, num_h=num_h, num_w=num_w,
                       eps=eps, training=True)
    out = jax.block_until_ready(out)

    perm = jax.random.permutation(k_perm, B * num_h * num_w).astype(jnp.int32)
    ref = _cpss_reference(x, perm, num_h, num_w, eps)
    assert out.shape == x.shape and out.dtype == x.dtype
    err = float(jnp.max(jnp.abs(out - ref)))
    assert err < 1e-4, f"max abs err {err}"
    print("KERNEL_OK")
</pallas_src>

<mosaic_0001>
module attributes {stable_mosaic.version = 11 : i64} {
  func.func @_stats_kernel(%arg0: i32, %arg1: i32, %arg2: i32, %arg3: memref<1x4x1x8x16xf32, #tpu.memory_space<vmem>>, %arg4: memref<1x4x1x1x2xf32, #tpu.memory_space<vmem>>, %arg5: memref<1x4x1x1x2xf32, #tpu.memory_space<vmem>>) attributes {dimension_semantics = [#tpu.dimension_semantics<parallel>, #tpu.dimension_semantics<parallel>, #tpu.dimension_semantics<parallel>], iteration_bounds = array<i64: 2, 2, 1>, scalar_prefetch = 0 : i64, scratch_operands = 0 : i64, tpu.core_type = #tpu.core_type<tc>, window_params = [{transform_indices = @transform_0, window_bounds = array<i64: 1, 4, 1, 8, 16>}, {transform_indices = @transform_1, window_bounds = array<i64: 1, 4, 1, 1, 2>}, {transform_indices = @transform_2, window_bounds = array<i64: 1, 4, 1, 1, 2>}]} {
    %c0 = arith.constant 0 : index
    %c0_0 = arith.constant 0 : index
    %c0_1 = arith.constant 0 : index
    %c0_2 = arith.constant 0 : index
    %c0_3 = arith.constant 0 : index
    %0 = vector.load %arg3[%c0, %c0_0, %c0_1, %c0_2, %c0_3] : memref<1x4x1x8x16xf32, #tpu.memory_space<vmem>>, vector<1x4x1x8x16xf32>
    %1 = vector.extract_strided_slice %0 {offsets = [0, 0, 0, 0, 0], sizes = [1, 4, 1, 8, 8], strides = [1, 1, 1, 1, 1]} : vector<1x4x1x8x16xf32> to vector<1x4x1x8x8xf32>
    %cst = arith.constant dense<0.000000e+00> : vector<1x4x1x8xf32>
    %2 = vector.multi_reduction <add>, %1, %cst [4] : vector<1x4x1x8x8xf32> to vector<1x4x1x8xf32>
    %3 = vector.shape_cast %2 : vector<1x4x1x8xf32> to vector<1x4x1x8x1xf32>
    %cst_4 = arith.constant dense<0.000000e+00> : vector<1x4x1x1xf32>
    %4 = vector.multi_reduction <add>, %3, %cst_4 [3] : vector<1x4x1x8x1xf32> to vector<1x4x1x1xf32>
    %5 = vector.shape_cast %4 : vector<1x4x1x1xf32> to vector<1x4x1x1x1xf32>
    %cst_5 = arith.constant 1.562500e-02 : f32
    %6 = vector.broadcast %cst_5 : f32 to vector<1x4x1x1x1xf32>
    %7 = arith.mulf %5, %6 : vector<1x4x1x1x1xf32>
    %8 = vector.broadcast %7 : vector<1x4x1x1x1xf32> to vector<1x4x1x8x8xf32>
    %9 = arith.subf %1, %8 : vector<1x4x1x8x8xf32>
    %10 = arith.mulf %9, %9 : vector<1x4x1x8x8xf32>
    %cst_6 = arith.constant dense<0.000000e+00> : vector<1x4x1x8xf32>
    %11 = vector.multi_reduction <add>, %10, %cst_6 [4] : vector<1x4x1x8x8xf32> to vector<1x4x1x8xf32>
    %12 = vector.shape_cast %11 : vector<1x4x1x8xf32> to vector<1x4x1x8x1xf32>
    %cst_7 = arith.constant dense<0.000000e+00> : vector<1x4x1x1xf32>
    %13 = vector.multi_reduction <add>, %12, %cst_7 [3] : vector<1x4x1x8x1xf32> to vector<1x4x1x1xf32>
    %14 = vector.shape_cast %13 : vector<1x4x1x1xf32> to vector<1x4x1x1x1xf32>
    %cst_8 = arith.constant 0.0158730168 : f32
    %15 = vector.broadcast %cst_8 : f32 to vector<1x4x1x1x1xf32>
    %16 = arith.mulf %14, %15 : vector<1x4x1x1x1xf32>
    %c0_9 = arith.constant 0 : index
    %c0_10 = arith.constant 0 : index
    %c0_11 = arith.constant 0 : index
    %c0_12 = arith.constant 0 : index
    %c0_13 = arith.constant 0 : index
    %17 = vector.load %arg4[%c0_9, %c0_10, %c0_11, %c0_12, %c0_13] : memref<1x4x1x1x2xf32, #tpu.memory_space<vmem>>, vector<1x4x1x1x1xf32>
    tpu.vector_store %arg4[%c0_9, %c0_10, %c0_11, %c0_12, %c0_13], %7 {strides = array<i32>} : memref<1x4x1x1x2xf32, #tpu.memory_space<vmem>>, vector<1x4x1x1x1xf32>,
    %c0_14 = arith.constant 0 : index
    %c0_15 = arith.constant 0 : index
    %c0_16 = arith.constant 0 : index
    %c0_17 = arith.constant 0 : index
    %c0_18 = arith.constant 0 : index
    %18 = vector.load %arg5[%c0_14, %c0_15, %c0_16, %c0_17, %c0_18] : memref<1x4x1x1x2xf32, #tpu.memory_space<vmem>>, vector<1x4x1x1x1xf32>
    tpu.vector_store %arg5[%c0_14, %c0_15, %c0_16, %c0_17, %c0_18], %16 {strides = array<i32>} : memref<1x4x1x1x2xf32, #tpu.memory_space<vmem>>, vector<1x4x1x1x1xf32>,
    %19 = vector.extract_strided_slice %0 {offsets = [0, 0, 0, 0, 8], sizes = [1, 4, 1, 8, 8], strides = [1, 1, 1, 1, 1]} : vector<1x4x1x8x16xf32> to vector<1x4x1x8x8xf32>
    %cst_19 = arith.constant dense<0.000000e+00> : vector<1x4x1x8xf32>
    %20 = vector.multi_reduction <add>, %19, %cst_19 [4] : vector<1x4x1x8x8xf32> to vector<1x4x1x8xf32>
    %21 = vector.shape_cast %20 : vector<1x4x1x8xf32> to vector<1x4x1x8x1xf32>
    %cst_20 = arith.constant dense<0.000000e+00> : vector<1x4x1x1xf32>
    %22 = vector.multi_reduction <add>, %21, %cst_20 [3] : vector<1x4x1x8x1xf32> to vector<1x4x1x1xf32>
    %23 = vector.shape_cast %22 : vector<1x4x1x1xf32> to vector<1x4x1x1x1xf32>
    %cst_21 = arith.constant 1.562500e-02 : f32
    %24 = vector.broadcast %cst_21 : f32 to vector<1x4x1x1x1xf32>
    %25 = arith.mulf %23, %24 : vector<1x4x1x1x1xf32>
    %26 = vector.broadcast %25 : vector<1x4x1x1x1xf32> to vector<1x4x1x8x8xf32>
    %27 = arith.subf %19, %26 : vector<1x4x1x8x8xf32>
    %28 = arith.mulf %27, %27 : vector<1x4x1x8x8xf32>
    %cst_22 = arith.constant dense<0.000000e+00> : vector<1x4x1x8xf32>
    %29 = vector.multi_reduction <add>, %28, %cst_22 [4] : vector<1x4x1x8x8xf32> to vector<1x4x1x8xf32>
    %30 = vector.shape_cast %29 : vector<1x4x1x8xf32> to vector<1x4x1x8x1xf32>
    %cst_23 = arith.constant dense<0.000000e+00> : vector<1x4x1x1xf32>
    %31 = vector.multi_reduction <add>, %30, %cst_23 [3] : vector<1x4x1x8x1xf32> to vector<1x4x1x1xf32>
    %32 = vector.shape_cast %31 : vector<1x4x1x1xf32> to vector<1x4x1x1x1xf32>
    %cst_24 = arith.constant 0.0158730168 : f32
    %33 = vector.broadcast %cst_24 : f32 to vector<1x4x1x1x1xf32>
    %34 = arith.mulf %32, %33 : vector<1x4x1x1x1xf32>
    %c0_25 = arith.constant 0 : index
    %c0_26 = arith.constant 0 : index
    %c0_27 = arith.constant 0 : index
    %c0_28 = arith.constant 0 : index
    %c1 = arith.constant 1 : index
    %35 = vector.load %arg4[%c0_25, %c0_26, %c0_27, %c0_28, %c1] : memref<1x4x1x1x2xf32, #tpu.memory_space<vmem>>, vector<1x4x1x1x1xf32>
    tpu.vector_store %arg4[%c0_25, %c0_26, %c0_27, %c0_28, %c1], %25 {strides = array<i32>} : memref<1x4x1x1x2xf32, #tpu.memory_space<vmem>>, vector<1x4x1x1x1xf32>,
    %c0_29 = arith.constant 0 : index
    %c0_30 = arith.constant 0 : index
    %c0_31 = arith.constant 0 : index
    %c0_32 = arith.constant 0 : index
    %c1_33 = arith.constant 1 : index
    %36 = vector.load %arg5[%c0_29, %c0_30, %c0_31, %c0_32, %c1_33] : memref<1x4x1x1x2xf32, #tpu.memory_space<vmem>>, vector<1x4x1x1x1xf32>
    tpu.vector_store %arg5[%c0_29, %c0_30, %c0_31, %c0_32, %c1_33], %34 {strides = array<i32>} : memref<1x4x1x1x2xf32, #tpu.memory_space<vmem>>, vector<1x4x1x1x1xf32>,
    return
  }
  func.func @transform_0(%arg0: i32, %arg1: i32, %arg2: i32) -> (i32, i32, i32, i32, i32) {
    %c0_i32 = arith.constant 0 : i32
    %c0_i32_0 = arith.constant 0 : i32
    %c0_i32_1 = arith.constant 0 : i32
    return %arg0, %arg2, %arg1, %c0_i32, %c0_i32_0 : i32, i32, i32, i32, i32
  }
  func.func @transform_1(%arg0: i32, %arg1: i32, %arg2: i32) -> (i32, i32, i32, i32, i32) {
    %c0_i32 = arith.constant 0 : i32
    %c0_i32_0 = arith.constant 0 : i32
    %c0_i32_1 = arith.constant 0 : i32
    return %arg0, %arg2, %arg1, %c0_i32, %c0_i32_0 : i32, i32, i32, i32, i32
  }
  func.func @transform_2(%arg0: i32, %arg1: i32, %arg2: i32) -> (i32, i32, i32, i32, i32) {
    %c0_i32 = arith.constant 0 : i32
    %c0_i32_0 = arith.constant 0 : i32
    %c0_i32_1 = arith.constant 0 : i32
    return %arg0, %arg2, %arg1, %c0_i32, %c0_i32_0 : i32, i32, i32, i32, i32
  }
}

module attributes {stable_mosaic.version = 11 : i64} {
  func.func @_affine_kernel(%arg0: i32, %arg1: i32, %arg2: i32, %arg3: memref<1x4x1x8x16xf32, #tpu.memory_space<vmem>>, %arg4: memref<1x4x1x1x2xf32, #tpu.memory_space<vmem>>, %arg5: memref<1x4x1x1x2xf32, #tpu.memory_space<vmem>>, %arg6: memref<1x4x1x8x16xf32, #tpu.memory_space<vmem>>) attributes {dimension_semantics = [#tpu.dimension_semantics<parallel>, #tpu.dimension_semantics<parallel>, #tpu.dimension_semantics<parallel>], iteration_bounds = array<i64: 2, 2, 1>, scalar_prefetch = 0 : i64, scratch_operands = 0 : i64, tpu.core_type = #tpu.core_type<tc>, window_params = [{transform_indices = @transform_0, window_bounds = array<i64: 1, 4, 1, 8, 16>}, {transform_indices = @transform_1, window_bounds = array<i64: 1, 4, 1, 1, 2>}, {transform_indices = @transform_2, window_bounds = array<i64: 1, 4, 1, 1, 2>}, {transform_indices = @transform_3, window_bounds = array<i64: 1, 4, 1, 8, 16>}]} {
    %c0 = arith.constant 0 : index
    %c0_0 = arith.constant 0 : index
    %c0_1 = arith.constant 0 : index
    %c0_2 = arith.constant 0 : index
    %c0_3 = arith.constant 0 : index
    %0 = vector.load %arg3[%c0, %c0_0, %c0_1, %c0_2, %c0_3] : memref<1x4x1x8x16xf32, #tpu.memory_space<vmem>>, vector<1x4x1x8x16xf32>
    %c0_4 = arith.constant 0 : index
    %c0_5 = arith.constant 0 : index
    %c0_6 = arith.constant 0 : index
    %c0_7 = arith.constant 0 : index
    %c0_8 = arith.constant 0 : index
    %1 = vector.load %arg4[%c0_4, %c0_5, %c0_6, %c0_7, %c0_8] : memref<1x4x1x1x2xf32, #tpu.memory_space<vmem>>, vector<1x4x1x1x2xf32>
    %c0_9 = arith.constant 0 : index
    %c0_10 = arith.constant 0 : index
    %c0_11 = arith.constant 0 : index
    %c0_12 = arith.constant 0 : index
    %c0_13 = arith.constant 0 : index
    %2 = vector.load %arg5[%c0_9, %c0_10, %c0_11, %c0_12, %c0_13] : memref<1x4x1x1x2xf32, #tpu.memory_space<vmem>>, vector<1x4x1x1x2xf32>
    %3 = vector.extract_strided_slice %1 {offsets = [0, 0, 0, 0, 0], sizes = [1, 4, 1, 1, 1], strides = [1, 1, 1, 1, 1]} : vector<1x4x1x1x2xf32> to vector<1x4x1x1x1xf32>
    %4 = vector.shape_cast %3 : vector<1x4x1x1x1xf32> to vector<1x4x1x1x1xf32>
    %5 = vector.broadcast %4 : vector<1x4x1x1x1xf32> to vector<1x4x1x1x8xf32>
    %6 = vector.extract_strided_slice %1 {offsets = [0, 0, 0, 0, 1], sizes = [1, 4, 1, 1, 1], strides = [1, 1, 1, 1, 1]} : vector<1x4x1x1x2xf32> to vector<1x4x1x1x1xf32>
    %7 = vector.shape_cast %6 : vector<1x4x1x1x1xf32> to vector<1x4x1x1x1xf32>
    %8 = vector.broadcast %7 : vector<1x4x1x1x1xf32> to vector<1x4x1x1x8xf32>
    %9 = tpu.concatenate %5, %8 in 4 : vector<1x4x1x1x8xf32>, vector<1x4x1x1x8xf32> -> vector<1x4x1x1x16xf32>
    %10 = vector.extract_strided_slice %2 {offsets = [0, 0, 0, 0, 0], sizes = [1, 4, 1, 1, 1], strides = [1, 1, 1, 1, 1]} : vector<1x4x1x1x2xf32> to vector<1x4x1x1x1xf32>
    %11 = vector.shape_cast %10 : vector<1x4x1x1x1xf32> to vector<1x4x1x1x1xf32>
    %12 = vector.broadcast %11 : vector<1x4x1x1x1xf32> to vector<1x4x1x1x8xf32>
    %13 = vector.extract_strided_slice %2 {offsets = [0, 0, 0, 0, 1], sizes = [1, 4, 1, 1, 1], strides = [1, 1, 1, 1, 1]} : vector<1x4x1x1x2xf32> to vector<1x4x1x1x1xf32>
    %14 = vector.shape_cast %13 : vector<1x4x1x1x1xf32> to vector<1x4x1x1x1xf32>
    %15 = vector.broadcast %14 : vector<1x4x1x1x1xf32> to vector<1x4x1x1x8xf32>
    %16 = tpu.concatenate %12, %15 in 4 : vector<1x4x1x1x8xf32>, vector<1x4x1x1x8xf32> -> vector<1x4x1x1x16xf32>
    %17 = vector.broadcast %9 : vector<1x4x1x1x16xf32> to vector<1x4x1x8x16xf32>
    %18 = arith.mulf %0, %17 : vector<1x4x1x8x16xf32>
    %19 = vector.broadcast %16 : vector<1x4x1x1x16xf32> to vector<1x4x1x8x16xf32>
    %20 = arith.addf %18, %19 : vector<1x4x1x8x16xf32>
    %c0_14 = arith.constant 0 : index
    %c0_15 = arith.constant 0 : index
    %c0_16 = arith.constant 0 : index
    %c0_17 = arith.constant 0 : index
    %c0_18 = arith.constant 0 : index
    %21 = vector.load %arg6[%c0_14, %c0_15, %c0_16, %c0_17, %c0_18] : memref<1x4x1x8x16xf32, #tpu.memory_space<vmem>>, vector<1x4x1x8x16xf32>
    tpu.vector_store %arg6[%c0_14, %c0_15, %c0_16, %c0_17, %c0_18], %20 {strides = array<i32>} : memref<1x4x1x8x16xf32, #tpu.memory_space<vmem>>, vector<1x4x1x8x16xf32>,
    return
  }
  func.func @transform_0(%arg0: i32, %arg1: i32, %arg2: i32) -> (i32, i32, i32, i32, i32) {
    %c0_i32 = arith.constant 0 : i32
    %c0_i32_0 = arith.constant 0 : i32
    %c0_i32_1 = arith.constant 0 : i32
    return %arg0, %arg2, %arg1, %c0_i32, %c0_i32_0 : i32, i32, i32, i32, i32
  }
  func.func @transform_1(%arg0: i32, %arg1: i32, %arg2: i32) -> (i32, i32, i32, i32, i32) {
    %c0_i32 = arith.constant 0 : i32
    %c0_i32_0 = arith.constant 0 : i32
    %c0_i32_1 = arith.constant 0 : i32
    return %arg0, %arg2, %arg1, %c0_i32, %c0_i32_0 : i32, i32, i32, i32, i32
  }
  func.func @transform_2(%arg0: i32, %arg1: i32, %arg2: i32) -> (i32, i32, i32, i32, i32) {
    %c0_i32 = arith.constant 0 : i32
    %c0_i32_0 = arith.constant 0 : i32
    %c0_i32_1 = arith.constant 0 : i32
    return %arg0, %arg2, %arg1, %c0_i32, %c0_i32_0 : i32, i32, i32, i32, i32
  }
  func.func @transform_3(%arg0: i32, %arg1: i32, %arg2: i32) -> (i32, i32, i32, i32, i32) {
    %c0_i32 = arith.constant 0 : i32
    %c0_i32_0 = arith.constant 0 : i32
    %c0_i32_1 = arith.constant 0 : i32
    return %arg0, %arg2, %arg1, %c0_i32, %c0_i32_0 : i32, i32, i32, i32, i32
  }
}

</mosaic_0001>

<bundles_post_ra>
// kernel: _cpss_stylize.3
= control target key start
LH: loop header
LB: loop body
LE: loop exit
PB: predicated region body
PF: predicated region fallthrough
CT: control target
= control target key end

     0   :  { %8 = vsyncpa [#allocation6], 0  ;;  %s1090_s0 = inlined_call_operand.vmem [shape: f32[2,4,2,8,16], index: 0, kind: input, shape index: {}]   ;;  %s1091_s1 = inlined_call_operand.vmem [shape: f32[2,4,2,1,2], index: 1, kind: input, shape index: {}]   ;;  %s1092_s2 = inlined_call_operand.vmem [shape: f32[2,4,2,1,2], index: 2, kind: input, shape index: {}]   ;;  %s1093_s3 = inlined_call_operand.hbm [shape: f32[2,4,2,8,16], index: 3, kind: output, shape index: {}]  }
   0x1   :  { %10 = vsyncpa [#allocation6 + $0x1], 0  ;;  %s912_s12 = smov 0   ;;  %s914_s13 = smov 0  }
   0x2   :  { %s916_s14 = smov 0   ;;  %s918_s15 = smov 0  }
   0x3   :  { %s920_s16 = smov 0   ;;  %s922_s17 = smov 0  }
   0x4   :  { %s924_s18 = smov 0   ;;  %s926_s19 = smov 0  }
   0x5 LB: > { %s684_s20 = sadd.s32 4294967295, %s885_s19   ;;  %s685_s21 = sadd.s32 4294967294, %s885_s19   ;;  %s885_s19 = sphi %s926_s19, %s16_s19   ;;  %s881_s18 = sphi %s924_s18, %s1103_s18   ;;  %s877_s17 = sphi %s922_s17, %s1102_s17   ;;  %s873_s16 = sphi %s920_s16, %s1101_s16   ;;  %s869_s15 = sphi %s918_s15, %s1100_s15   ;;  %s865_s14 = sphi %s916_s14, %s1099_s14   ;;  %s861_s13 = sphi %s914_s13, %s1098_s13   ;;  %s857_s12 = sphi %s912_s12, %s1097_s12  }
   0x6   : > { %s31_s22 = sadd.s32 1, %s877_s17  ;;  %s35_s23 = sadd.s32 1, %s881_s18 }
   0x7   : > { %p33_p0 = scmp.ge.s32.totalorder %s31_s22, 2  ;;  %p53_p1 = scmp.ne.s32.totalorder %s865_s14, %s861_s13 }
   0x8   : > { %p54_p2 = scmp.eq.s32.totalorder %s885_s19, 0  ;;  %p147_p5 = scmp.eq.s32.totalorder %s684_s20, 3 }
   0x9   : > { %s1105_s22 = smov (%p33_p0, %s31_s22), 0  ;;  %s1107_s23 = smov (!%p33_p0, %s35_s23), %s881_s18 }
   0xa   : > { %s42_s24 = ssub.s32 %s877_s17, %s1105_s22  ;;  %p964_p3 = por %p54_p2, %p53_p1 }
   0xb   : > { %p37_p4 = scmp.ge.s32.totalorder %s1107_s23, 2  ;;  %p152_p6 = scmp.ne.s32.totalorder %s861_s13, %s857_s12 }
   0xc   : > { %p153_p7 = scmp.eq.s32.totalorder %s685_s21, 3  ;;  %p972_p8 = por %p147_p5, %p53_p1 }
   0xd   : > { %s1109_s23 = smov (%p37_p4, %s1107_s23), 0  ;;  %s46_s30 = sadd.s32 1, %s865_s14 }
   0xe   : > { %p976_p9 = por %p153_p7, %p152_p6  ;;  %s39_s28 = ssub.s32 %s881_s18, %s1109_s23 }
   0xf   : > { %s43_s29 = sor.u32 %s42_s24, %s39_s28  ;;  %p687_p11 = scmp.ge.s32.totalorder %s885_s19, 4 }
  0x10   : > { %p44_p10 = scmp.eq.s32.totalorder %s43_s29, 0 }
  0x11   : > { %169 = sbr.rel (%p687_p11) target bundleno = 50 (0x32), region = 16 }
  0x12   : > { %s984_s4 = scalar_select %p44_p10, %s865_s14, %s46_s30  }
  0x16   : > { %172 = sbr.rel (!%p964_p3) target bundleno = 32 (0x20), region = 20  ;;  %s174_s5 = sand.u32 (%p964_p3), 1, %s865_s14  }
  0x17   : > { %s689_s6 = sshll.u32 (%p964_p3), %s881_s18, 3  ;;  %s688_s7 = sshll.u32 (%p964_p3), %s174_s5, 5 }
  0x18   : > { %s181_s8 = sadd.s32 (%p964_p3), %s877_s17, %s689_s6  ;;  %s176_s21 = scalar_lea.vmem (%p964_p3), [#allocation2], %s688_s7 }
  0x19   : > { %s690_s9 = sshll.u32 (%p964_p3), %s181_s8, 3 }
  0x1a   : > { %s183_s20 = scalar_lea.vmem (%p964_p3), %s1090_s0, %s690_s9 }
  0x1b   : > { %v218_v0 = vld [vmem:[%s183_s20] sm:$0xff]  ;;  %v220_v1 = vld [vmem:[%s183_s20 + $0x10] sm:$0xff] }
  0x1c   : > { %v222_v2 = vld [vmem:[%s183_s20 + $0x20] sm:$0xff]  ;;  %219 = vst [vmem:[%s176_s21] sm:$0xff] %v218_v0  ;;  %v224_v3 = vld [vmem:[%s183_s20 + $0x30] sm:$0xff] }
  0x1d   : > { %221 = vst [vmem:[%s176_s21 + $0x8] sm:$0xff] %v220_v1 }
  0x1e   : > { %223 = vst [vmem:[%s176_s21 + $0x10] sm:$0xff] %v222_v2 }
  0x1f   : > { %225 = vst [vmem:[%s176_s21 + $0x18] sm:$0xff] %v224_v3 }
  0x20 PF: > { %231 = sbr.rel (!%p964_p3) target bundleno = 41 (0x29), region = 58  ;;  %s233_s24 = sand.u32 (%p964_p3), 1, %s865_s14  }
  0x21   : > { %s692_s28 = sshll.u32 (%p964_p3), %s881_s18, 3  ;;  %s691_s29 = sshll.u32 (%p964_p3), %s233_s24, 2 }
  0x22   : > { %s240_s30 = sadd.s32 (%p964_p3), %s877_s17, %s692_s28  ;;  %s235_s8 = scalar_lea.vmem (%p964_p3), [#allocation3], %s691_s29 }
  0x23   : > { %s241_s7 = scalar_lea.vmem (%p964_p3), %s1091_s1, %s240_s30 }
  0x24   : > { %v258_v4 = vld [vmem:[%s241_s7] sm:$0x1] (%p964_p3)  ;;  %v260_v5 = vld [vmem:[%s241_s7 + $0x2] sm:$0x1] (%p964_p3)  ;;  %v262_v6 = vld [vmem:[%s241_s7 + $0x4] sm:$0x1] (%p964_p3) }
  0x25   : > { %259 = vst [vmem:[%s235_s8] sm:$0x1] %v258_v4  ;;  %v264_v7 = vld [vmem:[%s241_s7 + $0x6] sm:$0x1] }
  0x26   : > { %261 = vst [vmem:[%s235_s8 + $0x1] sm:$0x1] %v260_v5 }
  0x27   : > { %263 = vst [vmem:[%s235_s8 + $0x2] sm:$0x1] %v262_v6 }
  0x28   : > { %265 = vst [vmem:[%s235_s8 + $0x3] sm:$0x1] %v264_v7 }
  0x29 PF: > { %289 = sbr.rel (!%p964_p3) target bundleno = 50 (0x32), region = 92  ;;  %s291_s9 = sand.u32 (%p964_p3), 1, %s865_s14  }
  0x2a   : > { %s694_s10 = sshll.u32 (%p964_p3), %s881_s18, 3  ;;  %s693_s11 = sshll.u32 (%p964_p3), %s291_s9, 2 }
  0x2b   : > { %s298_s20 = sadd.s32 (%p964_p3), %s877_s17, %s694_s10  ;;  %s293_s29 = scalar_lea.vmem (%p964_p3), [#allocation4], %s693_s11 }
  0x2c   : > { %s299_s28 = scalar_lea.vmem (%p964_p3), %s1092_s2, %s298_s20 }
  0x2d   : > { %v316_v8 = vld [vmem:[%s299_s28] sm:$0x1] (%p964_p3)  ;;  %v318_v9 = vld [vmem:[%s299_s28 + $0x2] sm:$0x1] (%p964_p3)  ;;  %v320_v10 = vld [vmem:[%s299_s28 + $0x4] sm:$0x1] (%p964_p3) }
  0x2e   : > { %317 = vst [vmem:[%s293_s29] sm:$0x1] %v316_v8  ;;  %v322_v11 = vld [vmem:[%s299_s28 + $0x6] sm:$0x1] }
  0x2f   : > { %319 = vst [vmem:[%s293_s29 + $0x1] sm:$0x1] %v318_v9 }
  0x30   : > { %321 = vst [vmem:[%s293_s29 + $0x2] sm:$0x1] %v320_v10 }
  0x31   : > { %323 = vst [vmem:[%s293_s29 + $0x3] sm:$0x1] %v322_v11 }
  0x32 PF: > { %p695_p12 = scmp.ge.s32.totalorder %s885_s19, 1  ;;  %p346_p13 = scmp.lt.s32.totalorder %s885_s19, 5 }
  0x34   : > { %p347_p0 = pnand %p695_p12, %p346_p13 }
  0x35   : > { %s1014_s25 = sand.u32 (!%p347_p0), 1, %s861_s13   ;;  %s701_s10 = sshll.u32 (!%p347_p0), %s873_s16, 3 }
  0x36   : > { %350 = sbr.rel (%p347_p0) target bundleno = 232 (0xe8), region = 126  ;;  %s697_s30 = sshll.u32 (!%p347_p0), %s1014_s25, 2 }
  0x37   : > { %s362_s5 = scalar_lea.vmem (!%p347_p0), [#allocation3], %s697_s30  ;;  %s369_s6 = scalar_lea.vmem (!%p347_p0), [#allocation4], %s697_s30 }
  0x38   : > { %s696_s7 = sshll.u32 (!%p347_p0), %s1014_s25, 5  ;;  %s546_s11 = sadd.s32 (!%p347_p0), %s869_s15, %s701_s10 }
  0x39   : > { %s1022_s8 = scalar_lea.vmem (!%p347_p0), [#allocation2], %s696_s7  ;;  %s1029_s9 = scalar_lea.vmem (!%p347_p0), [#allocation5], %s696_s7 }
  0x3a   : > { %s702_s20 = sshll.u32 (!%p347_p0), %s546_s11, 3  ;;  %s549_s28 = sshll.u32 (!%p347_p0), %s1029_s9, 4  ;;  %s550_s28 = int_to_ptr.vmem [resolvable:$true] %s549_s28 }
  0x3b   : > { %v887_v12 = vmov 1   ;;  %v888_v13 = vmov 0   ;;  %v408_v14 = vld [vmem:[%s362_s5 + $0x2] sm:$0x1]  ;;  %v406_v15 = vld [vmem:[%s362_s5] sm:$0x1]  ;;  %s548_s24 = scalar_lea.hbm %s1093_s3, %s702_s20 }
  0x3c   : > { %783 = vset.pattern.permute.xlu0 %v887_v12  ;;  %781 = vset.pattern.permute.xlu1 %v888_v13  ;;  %v409_v16 = vld [vmem:[%s362_s5 + $0x3] sm:$0x1]  ;;  %v407_v17 = vld [vmem:[%s362_s5 + $0x1] sm:$0x1]  ;;  %v410_v18 = vld [vmem:[%s369_s6] sm:$0x1] }
  0x3d   : > { %782 = vset.pattern.permute.xlu2 %v887_v12  ;;  %449 = vperm.xlu0 %783, %v408_v14   ;;  %v413_v19 = vld [vmem:[%s369_s6 + $0x3] sm:$0x1]  ;;  %v411_v20 = vld [vmem:[%s369_s6 + $0x1] sm:$0x1]  ;;  %v412_v21 = vld [vmem:[%s369_s6 + $0x2] sm:$0x1] }
  0x3e   : > { %428 = vperm.xlu1 %781, %v408_v14   ;;  %439 = vperm.xlu2 %782, %v406_v15   ;;  %vm458_vm0 = vcmask 64512   ;;  %v405_v44 = vld [vmem:[%s1022_s8 + $0x18] sm:$0xff]  ;;  %v403_v48 = vld [vmem:[%s1022_s8 + $0x8] sm:$0xff]  ;;  %vm527_vm1 = vcmask 130048   ;;  %v402_v2 = vld [vmem:[%s1022_s8] sm:$0xff]  ;;  %s551_s15 = sshll.u32 %s548_s24, 4  ;;  %s552_s15 = int_to_ptr.hbm [resolvable:$true] %s551_s15 }
  0x3f   : > { %v404_v11 = vld [vmem:[%s1022_s8 + $0x10] sm:$0xff]  ;;  %s533_s29 = scalar_lea.sflag [#allocation6], %s1014_s25  ;;  %s805_s30 = sshra.s32 %s552_s15, 4  ;;  %s806_s30 = int_to_ptr.hbm [resolvable:$true] %s805_s30 }
  0x40   : > { %s807_s5 = scalar_lea.hbm %s806_s30, 32  ;;  %s811_s8 = scalar_lea.hbm %s1093_s3, 128 }
  0x41   : > { %p808_p1 = scmp.ne.s32.totalorder %s806_s30, %s807_s5  ;;  %p812_p4 = scmp.lt.s32.totalorder %s806_s30, %s1093_s3 }
  0x42   : > { %p813_p5 = scmp.lt.s32.totalorder %s811_s8, %s807_s5 }
  0x43   : > { %p809_p2 = pnand %p808_p1, %p972_p8 }
  0x44   : > { %p814_p6 = por %p813_p5, %p812_p4 }
  0x45   : > { %784 = vset.pattern.permute.xlu0 %v888_v13  ;;  %p810_p3 = pneg %p809_p2 }
  0x46   : > { %434 = vperm.xlu1 %781, %v409_v16   ;;  %416 = vperm.xlu0 %784, %v406_v15  }
  0x47   : > { %444 = vperm.xlu2 %782, %v407_v17   ;;  %p815_p7 = pnand %p814_p6, %p810_p3 }
  0x4e   : > { %785 = vset.pattern.permute.xlu1 %v887_v12  ;;  %422 = vperm.xlu0 %784, %v407_v17  }
  0x4f   : > { %454 = vperm.xlu1 %785, %v409_v16   ;;  %786 = vset.pattern.permute.xlu2 %v888_v13 }
  0x50   : > { %465 = vperm.xlu2 %786, %v410_v18  }
  0x56   : > { %483 = vperm.xlu0 %784, %v413_v19  }
  0x57   : > { %787 = vset.pattern.permute.xlu1 %v888_v13 }
  0x58   : > { %471 = vperm.xlu1 %787, %v411_v20   ;;  %477 = vperm.xlu2 %786, %v412_v21  }
  0x5e   : > { %790 = vset.pattern.permute.xlu0 %v887_v12 }
  0x60   : > { %788 = vset.pattern.permute.xlu1 %v887_v12  ;;  %789 = vset.pattern.permute.xlu2 %v887_v12 }
  0x61   : > { %488 = vperm.xlu1 %788, %v410_v18   ;;  %493 = vperm.xlu2 %789, %v411_v20  }
  0x69   : > { %498 = vperm.xlu1 %788, %v412_v21   ;;  %503 = vperm.xlu2 %789, %v413_v19  }
  0x98   : > { %v440_v22 = vpop.permute.xlu2 %439 }
  0x99   : > { %v442_v55 = vperm.slane %v440_v22, 0 }
  0xa1   : > { %v445_v23 = vpop.permute.xlu2 %444 }
  0xa2   : > { %v447_v36 = vperm.slane %v445_v23, 0 }
  0xaa   : > { %v466_v24 = vpop.permute.xlu2 %465 }
  0xab   : > { %v468_v1 = vperm.slane %v466_v24, 0 }
  0xaf   : > { %v450_v25 = vpop.permute.xlu0 %449 }
  0xb0   : > { %v429_v26 = vpop.permute.xlu1 %428  ;;  %v452_v63 = vperm.slane %v450_v25, 0 }
  0xb1   : > { %v431_v0 = vperm.slane %v429_v26, 0 }
  0xb2   : > { %v1017_v27 = vpop.permute.xlu2 %477 }
  0xb3   : > { %v461_v7 = vsel %vm458_vm0, %v431_v0, %v452_v63  ;;  %v480_v12 = vperm.slane %v1017_v27, 0 }
  0xb4   : > { %v513_v9 = vperm.slane %v461_v7, 0 }
  0xb6   : > { %v517_v15 = vmul.f32 %v513_v9, %v404_v11 }
  0xb8   : > { %v435_v28 = vpop.permute.xlu1 %434  ;;  %v417_v29 = vpop.permute.xlu0 %416 }
  0xb9   : > { %v437_v35 = vperm.slane %v435_v28, 0  ;;  %v419_v50 = vperm.slane %v417_v29, 0 }
  0xbb   : > { %v494_v30 = vpop.permute.xlu2 %493  ;;  %v459_v59 = vsel %vm458_vm0, %v419_v50, %v442_v55 }
  0xbc   : > { %v496_v42 = vperm.slane %v494_v30, 0  ;;  %v511_v61 = vperm.slane %v459_v59, 0 }
  0xbe   : > { %v515_v5 = vmul.f32 %v511_v61, %v402_v2 }
  0xc0   : > { %v423_v32 = vpop.permute.xlu0 %422 }
  0xc1   : > { %v455_v31 = vpop.permute.xlu1 %454  ;;  %v425_v34 = vperm.slane %v423_v32, 0 }
  0xc2   : > { %v457_v33 = vperm.slane %v455_v31, 0 }
  0xc3   : > { %v504_v37 = vpop.permute.xlu2 %503  ;;  %v460_v39 = vsel %vm458_vm0, %v425_v34, %v447_v36 }
  0xc4   : > { %v462_v38 = vsel %vm458_vm0, %v437_v35, %v457_v33  ;;  %v506_v40 = vperm.slane %v504_v37, 0  ;;  %v512_v45 = vperm.slane %v460_v39, 0 }
  0xc5   : > { %v514_v41 = vperm.slane %v462_v38, 0 }
  0xc6   : > { %v516_v56 = vmul.f32 %v512_v45, %v403_v48 }
  0xc7   : > { %v518_v52 = vmul.f32 %v514_v41, %v405_v44 }
  0xc8   : > { %v484_v43 = vpop.permute.xlu0 %483 }
  0xc9   : > { %v486_v46 = vperm.slane %v484_v43, 0 }
  0xca   : > { %v472_v47 = vpop.permute.xlu1 %471 }
  0xcb   : > { %v474_v49 = vperm.slane %v472_v47, 0  ;;  %v510_v51 = vsel %vm458_vm0, %v486_v46, %v506_v40 }
  0xcc   : > { %v522_v53 = vperm.slane %v510_v51, 0 }
  0xcd   : > { %v508_v54 = vsel %vm458_vm0, %v474_v49, %v496_v42 }
  0xce   : > { %v520_v57 = vperm.slane %v508_v54, 0  ;;  %v526_v58 = vadd.f32 %v522_v53, %v518_v52 }
  0xd0   : > { %v524_v60 = vadd.f32 %v520_v57, %v516_v56  ;;  %531 = vst.msk [vmem:[%s1029_s9 + $0x18] sm:$0xff] %vm527_vm1, %v526_v58 }
  0xd2   : > { %529 = vst.msk [vmem:[%s1029_s9 + $0x8] sm:$0xff] %vm527_vm1, %v524_v60 }
  0xd3   : > { %v489_v62 = vpop.permute.xlu1 %488 }
  0xd4   : > { %v491_v3 = vperm.slane %v489_v62, 0 }
  0xd6   : > { %v507_v4 = vsel %vm458_vm0, %v468_v1, %v491_v3 }
  0xd7   : > { %v519_v6 = vperm.slane %v507_v4, 0 }
  0xd9   : > { %v523_v8 = vadd.f32 %v519_v6, %v515_v5 }
  0xdb   : > { %528 = vst.msk [vmem:[%s1029_s9] sm:$0xff] %vm527_vm1, %v523_v8  ;;  %v499_v10 = vpop.permute.xlu1 %498 }
  0xdc   : > { %v501_v13 = vperm.slane %v499_v10, 0 }
  0xde   : > { %v509_v14 = vsel %vm458_vm0, %v480_v12, %v501_v13 }
  0xdf   : > { %v521_v16 = vperm.slane %v509_v14, 0 }
  0xe1   : > { %v525_v17 = vadd.f32 %v521_v16, %v517_v15 }
  0xe3   : > { %530 = vst.msk [vmem:[%s1029_s9 + $0x10] sm:$0xff] %vm527_vm1, %v525_v17 }
  0xe4   : > { %818 = shalt.err (!%p815_p7)
}
  0xe5   : > { %s889_s25 = smov 128   ;;  %s890_s9 = smov 256  }
  0xe6   : > { %s891_s20 = smov 8  }
  0xe7   : > { %705 = dma.vmem_to_hbm [thread:$0]  (%p972_p8), %s550_s28, 512, %s552_s15, %s533_s29, %s889_s25, %s890_s9, %s891_s20  }
  0xe8 PF: > { %p711_p10 = scmp.ge.s32.totalorder %s885_s19, 2  ;;  %s566_s16 = sand.u32 1, %s857_s12  }
  0xe9   : > { %s567_s21 = scalar_lea.sflag [#allocation6], %s566_s16 }
  0xea   : > { %p708_p11 = pnand %p711_p10, %p976_p9 }
  0xec   : > { %p709_p12 = pneg %p708_p11 }
  0xee   : > { %852 = dma.done.wait (%p709_p12), %s567_s21, 512  }
  0xef   : > { %854 = vsyncadd (%p709_p12), %s567_s21, 4294966784  ;;  %s16_s19 = sadd.s32 1, %s885_s19   ;;  %s1097_s12 = smov %s861_s13 }
  0xf0   : > { %p13_p13 = scmp.ge.s32.totalorder %s16_s19, 6   ;;  %s1098_s13 = smov %s865_s14 }
  0xf1   : > { %s1099_s14 = smov %s984_s4  ;;  %s1100_s15 = smov %s877_s17 }
  0xf2   : > { %s1101_s16 = smov %s881_s18  ;;  %s1102_s17 = smov %s1105_s22 }
  0xf3   : > { %s1103_s18 = smov %s1109_s23  ;;  %15 = sbr.rel (!%p13_p13) target bundleno = 5 (0x5), region = 194 }
  0xf8   :  { %573 = vsyncpa [#allocation6], 1 }
  0xf9   :  { %575 = vsyncpa [#allocation6 + $0x1], 1 }

// kernel: _cpss_stylize.2
= control target key start
LH: loop header
LB: loop body
LE: loop exit
PB: predicated region body
PF: predicated region fallthrough
CT: control target
= control target key end

     0   :  { %8 = vsyncpa [#allocation3], 0  ;;  %s1106_s0 = inlined_call_operand.hbm [shape: f32[2,4,2,8,16], index: 0, kind: input, shape index: {}]   ;;  %s1107_s1 = inlined_call_operand.vmem [shape: f32[2,4,2,1,2], index: 1, kind: output, shape index: {0}]   ;;  %s1108_s2 = inlined_call_operand.vmem [shape: f32[2,4,2,1,2], index: 2, kind: output, shape index: {1}]  }
   0x1   :  { %10 = vsyncpa [#allocation3 + $0x1], 0  ;;  %s875_s9 = smov 0   ;;  %s877_s10 = smov 0  }
   0x2   :  { %s879_s11 = smov 0   ;;  %s881_s12 = smov 0  }
   0x3   :  { %s883_s13 = smov 0   ;;  %s885_s14 = smov 0  }
   0x4   :  { %s887_s15 = smov 0   ;;  %s889_s16 = smov 0  }
   0x5 LB: > { %s666_s17 = sadd.s32 4294967295, %s854_s16   ;;  %s31_s18 = sadd.s32 1, %s846_s14  ;;  %s854_s16 = sphi %s889_s16, %s16_s16   ;;  %s850_s15 = sphi %s887_s15, %s1118_s15   ;;  %s846_s14 = sphi %s885_s14, %s1117_s14   ;;  %s842_s13 = sphi %s883_s13, %s1116_s13   ;;  %s838_s12 = sphi %s881_s12, %s1115_s12   ;;  %s834_s11 = sphi %s879_s11, %s1114_s11   ;;  %s830_s10 = sphi %s877_s10, %s1113_s10   ;;  %s826_s9 = sphi %s875_s9, %s1112_s9  }
   0x6   : > { %p33_p0 = scmp.ge.s32.totalorder %s31_s18, 2  ;;  %s35_s19 = sadd.s32 1, %s850_s15 }
   0x7   : > { %s46_s20 = sadd.s32 1, %s834_s11  ;;  %p53_p1 = scmp.ne.s32.totalorder %s834_s11, %s830_s10 }
   0x8   : > { %s1120_s18 = smov (%p33_p0, %s31_s18), 0  ;;  %s1122_s19 = smov (!%p33_p0, %s35_s19), %s850_s15 }
   0x9   : > { %s42_s21 = ssub.s32 %s846_s14, %s1120_s18  ;;  %p54_p2 = scmp.eq.s32.totalorder %s854_s16, 0 }
   0xa   : > { %p37_p3 = scmp.ge.s32.totalorder %s1122_s19, 2  ;;  %p59_p4 = scmp.ne.s32.totalorder %s830_s10, %s826_s9 }
   0xb   : > { %p929_p5 = por %p54_p2, %p53_p1  ;;  %p60_p6 = scmp.eq.s32.totalorder %s666_s17, 0 }
   0xc   : > { %s1124_s19 = smov (%p37_p3, %s1122_s19), 0  ;;  %p87_p8 = scmp.eq.s32.totalorder %s666_s17, 3 }
   0xd   : > { %p935_p7 = por %p60_p6, %p59_p4  ;;  %s39_s24 = ssub.s32 %s850_s15, %s1124_s19 }
   0xe   : > { %s43_s25 = sor.u32 %s42_s21, %s39_s24  ;;  %p944_p9 = por %p87_p8, %p53_p1 }
   0xf   : > { %p44_p10 = scmp.eq.s32.totalorder %s43_s25, 0  ;;  %p689_p11 = scmp.lt.s32.totalorder %s854_s16, 4 }
  0x10   : > { %s143_s27 = sand.u32 1, %s834_s11   ;;  %s671_s28 = sshll.u32 %s850_s15, 3 }
  0x11   : > { %s952_s29 = scalar_select %p44_p10, %s834_s11, %s46_s20  }
  0x12   : > { %s670_s30 = sshll.u32 %s143_s27, 5  ;;  %s154_s3 = sadd.s32 %s846_s14, %s671_s28 }
  0x13   : > { %s672_s4 = sshll.u32 %s154_s3, 3  ;;  %s147_s5 = scalar_lea.vmem [#allocation2], %s670_s30 }
  0x14   : > { %s159_s6 = sshll.u32 %s147_s5, 4  ;;  %s156_s9 = scalar_lea.hbm %s1106_s0, %s672_s4  ;;  %s160_s6 = int_to_ptr.vmem [resolvable:$true] %s159_s6 }
  0x15   : > { %s157_s17 = sshll.u32 %s156_s9, 4  ;;  %p686_p12 = pnand %p689_p11, %p929_p5  ;;  %s158_s17 = int_to_ptr.hbm [resolvable:$true] %s157_s17 }
  0x16   : > { %p673_p13 = scmp.ge.s32.totalorder %s854_s16, 1  ;;  %s144_s21 = scalar_lea.sflag [#allocation3], %s143_s27 }
  0x17   : > { %s856_s24 = smov 256   ;;  %s857_s20 = smov 128  }
  0x18   : > { %s858_s25 = smov 8   ;;  %p167_p0 = scmp.lt.s32.totalorder %s854_s16, 5 }
  0x19   : > { %688 = dma.hbm_to_vmem [thread:$0]  (!%p686_p12), %s158_s17, 512, %s160_s6, %s144_s21, %s856_s24, %s857_s20, %s858_s25  }
  0x1a   : > { %p168_p1 = pnand %p673_p13, %p167_p0 }
  0x1b   : > { %s963_s28 = sand.u32 (!%p168_p1), 1, %s830_s10  }
  0x1c   : > { %171 = sbr.rel (%p168_p1) target bundleno = 548 (0x224), region = 24  ;;  %s674_s30 = sshll.u32 (!%p168_p1), %s963_s28, 5 }
  0x1d   : > { %s174_s3 = scalar_lea.sflag (!%p168_p1), [#allocation3], %s963_s28  ;;  %s177_s22 = scalar_lea.vmem (!%p168_p1), [#allocation2], %s674_s30 }
  0x21   : > { %821 = dma.done.wait (%p935_p7), %s174_s3, 512  }
  0x22   : > { %823 = vsyncadd (%p935_p7), %s174_s3, 4294966784  ;;  %v971_v0 = vld [vmem:[%s177_s22 + $0x10] sm:$0xff]  ;;  %v973_v1 = vld [vmem:[%s177_s22] sm:$0xff]  ;;  %s859_s27 = smov 120   ;;  %vm209_vm0 = vcmask 64512   ;;  %s675_s23 = sshll.u32 %s963_s28, 2 }
  0x23   : > { %315 = vrot.lane.b32.xlu1 %v971_v0, %s859_s27  ;;  %311 = vrot.lane.b32.xlu0 %v973_v1, %s859_s27  ;;  %v979_v2 = vld [vmem:[%s177_s22 + $0x8] sm:$0xff]  ;;  %v981_v3 = vld [vmem:[%s177_s22 + $0x18] sm:$0xff]  ;;  %v210_v12 = vsel %vm209_vm0, %v973_v1, 0.0  ;;  %v216_v14 = vsel %vm209_vm0, %v971_v0, 0.0  ;;  %vm298_vm1 = vcmask 0   ;;  %vm427_vm2 = vcmask 8200  }
  0x24   : > { %v213_v13 = vsel %vm209_vm0, %v979_v2, 0.0  ;;  %v219_v15 = vsel %vm209_vm0, %v981_v3, 0.0  ;;  %s1010_s4 = scalar_lea.vmem [#allocation4], %s675_s23  ;;  %s1042_s5 = scalar_lea.vmem [#allocation5], %s675_s23 }
  0x25   : > { %s679_s6 = sshll.u32 (%p944_p9), %s842_s13, 3 }
  0x26   : > { %s451_s7 = sadd.s32 (%p944_p9), %s838_s12, %s679_s6 }
  0x27   : > { %s452_s17 = scalar_lea.vmem (%p944_p9), %s1107_s1, %s451_s7 }
  0x2b   : > { %313 = vrot.lane.b32.xlu0 %v979_v2, %s859_s27  ;;  %317 = vrot.lane.b32.xlu1 %v981_v3, %s859_s27 }
  0x95   : > { %v316_v4 = vpop.permute.xlu1 %315  ;;  %v312_v5 = vpop.permute.xlu0 %311 }
  0x96   : > { %v329_v6 = vsel %vm209_vm0, %v316_v4, 0.0  ;;  %v323_v7 = vsel %vm209_vm0, %v312_v5, 0.0 }
  0x97   : > { %330 = vadd.xlane.f32.xlu0 %v329_v6  ;;  %324 = vadd.xlane.f32.xlu2 %v323_v7 }
  0x9d   : > { %v314_v8 = vpop.permute.xlu0 %313  ;;  %v318_v9 = vpop.permute.xlu1 %317 }
  0x9e   : > { %v326_v10 = vsel %vm209_vm0, %v314_v8, 0.0  ;;  %v332_v11 = vsel %vm209_vm0, %v318_v9, 0.0 }
  0x9f   : > { %327 = vadd.xlane.f32.xlu2 %v326_v10  ;;  %333 = vadd.xlane.f32.xlu1 %v332_v11 }
  0xa7   : > { %211 = vadd.xlane.f32.xlu2 %v210_v12 }
  0xaf   : > { %214 = vadd.xlane.f32.xlu2 %v213_v13 }
  0xb7   : > { %217 = vadd.xlane.f32.xlu2 %v216_v14 }
  0xbf   : > { %220 = vadd.xlane.f32.xlu2 %v219_v15 }
 0x10a   : > { %v325_v16 = vpop.xlane.xlu2 %324  ;;  %v331_v17 = vpop.xlane.xlu0 %330 }
 0x10b   : > { %v335_v18 = vrot.slane %v325_v16, 4  ;;  %v347_v19 = vrot.slane %v331_v17, 4 }
 0x10d   : > { %v336_v20 = vadd.f32 %v335_v18, %v325_v16  ;;  %v348_v21 = vadd.f32 %v347_v19, %v331_v17 }
 0x10f   : > { %v337_v22 = vrot.slane %v336_v20, 2  ;;  %v349_v23 = vrot.slane %v348_v21, 2 }
 0x111   : > { %v338_v24 = vadd.f32 %v337_v22, %v336_v20  ;;  %v350_v25 = vadd.f32 %v349_v23, %v348_v21 }
 0x112   : > { %v328_v26 = vpop.xlane.xlu2 %327  ;;  %v334_v27 = vpop.xlane.xlu1 %333 }
 0x113   : > { %v339_v28 = vrot.slane %v338_v24, 1  ;;  %v351_v29 = vrot.slane %v350_v25, 1  ;;  %v341_v30 = vrot.slane %v328_v26, 4  ;;  %v353_v31 = vrot.slane %v334_v27, 4 }
 0x115   : > { %v340_v32 = vadd.f32 %v339_v28, %v338_v24  ;;  %v352_v33 = vadd.f32 %v351_v29, %v350_v25  ;;  %v342_v34 = vadd.f32 %v341_v30, %v328_v26  ;;  %v354_v35 = vadd.f32 %v353_v31, %v334_v27 }
 0x117   : > { %v359_v36 = vmul.f32 0.015625, %v340_v32  ;;  %v361_v37 = vmul.f32 0.015625, %v352_v33  ;;  %v343_v38 = vrot.slane %v342_v34, 2  ;;  %v355_v39 = vrot.slane %v354_v35, 2 }
 0x119   : > { %v344_v40 = vadd.f32 %v343_v38, %v342_v34  ;;  %v365_v41 = vsub.f32 %v971_v0, %v361_v37  ;;  %v363_v42 = vsub.f32 %v973_v1, %v359_v36  ;;  %v356_v43 = vadd.f32 %v355_v39, %v354_v35 }
 0x11a   : > { %v212_v44 = vpop.xlane.xlu2 %211 }
 0x11b   : > { %v345_v45 = vrot.slane %v344_v40, 1  ;;  %v222_v46 = vrot.slane %v212_v44, 4  ;;  %v369_v47 = vmul.f32 %v365_v41, %v365_v41  ;;  %v367_v48 = vmul.f32 %v363_v42, %v363_v42 }
 0x11c   : > { %v357_v49 = vrot.slane %v356_v43, 1 }
 0x11d   : > { %v346_v50 = vadd.f32 %v345_v45, %v344_v40  ;;  %v223_v51 = vadd.f32 %v222_v46, %v212_v44  ;;  %379 = vrot.lane.b32.xlu1 %v369_v47, %s859_s27  ;;  %375 = vrot.lane.b32.xlu2 %v367_v48, %s859_s27 }
 0x11e   : > { %v358_v52 = vadd.f32 %v357_v49, %v356_v43 }
 0x11f   : > { %v360_v53 = vmul.f32 0.015625, %v346_v50  ;;  %v224_v54 = vrot.slane %v223_v51, 2 }
 0x120   : > { %v362_v55 = vmul.f32 0.015625, %v358_v52 }
 0x121   : > { %v225_v56 = vadd.f32 %v224_v54, %v223_v51  ;;  %v364_v57 = vsub.f32 %v979_v2, %v360_v53 }
 0x122   : > { %v215_v58 = vpop.xlane.xlu2 %214  ;;  %v366_v59 = vsub.f32 %v981_v3, %v362_v55 }
 0x123   : > { %v226_v60 = vrot.slane %v225_v56, 1  ;;  %v228_v61 = vrot.slane %v215_v58, 4  ;;  %v368_v62 = vmul.f32 %v364_v57, %v364_v57 }
 0x124   : > { %v370_v63 = vmul.f32 %v366_v59, %v366_v59 }
 0x125   : > { %v229_v4 = vadd.f32 %v228_v61, %v215_v58  ;;  %377 = vrot.lane.b32.xlu0 %v368_v62, %s859_s27  ;;  %v227_v5 = vadd.f32 %v226_v60, %v225_v56 }
 0x126   : > { %381 = vrot.lane.b32.xlu2 %v370_v63, %s859_s27 }
 0x127   : > { %v230_v6 = vrot.slane %v229_v4, 2  ;;  %v246_v7 = vmul.f32 0.015625, %v227_v5 }
 0x129   : > { %v231_v8 = vadd.f32 %v230_v6, %v229_v4  ;;  %299 = vst.msk [vmem:[%s1010_s4] sm:$0x1] %vm298_vm1, %v246_v7  ;;  %v250_v28 = vsub.f32 %v973_v1, %v246_v7 }
 0x12a   : > { %v218_v9 = vpop.xlane.xlu2 %217  ;;  %428 = vst.msk [vmem:[%s1010_s4] sm:$0x1] %vm427_vm2, %v359_v36 }
 0x12b   : > { %v232_v10 = vrot.slane %v231_v8, 1  ;;  %v234_v11 = vrot.slane %v218_v9, 4  ;;  %v254_v30 = vmul.f32 %v250_v28, %v250_v28 }
 0x12d   : > { %v235_v12 = vadd.f32 %v234_v11, %v218_v9  ;;  %v233_v13 = vadd.f32 %v232_v10, %v231_v8  ;;  %v258_v32 = vsel %vm209_vm0, %v254_v30, 0.0 }
 0x12f   : > { %v236_v14 = vrot.slane %v235_v12, 2  ;;  %v247_v15 = vmul.f32 0.015625, %v233_v13 }
 0x131   : > { %v237_v16 = vadd.f32 %v236_v14, %v235_v12  ;;  %300 = vst.msk [vmem:[%s1010_s4 + $0x1] sm:$0x1] %vm298_vm1, %v247_v15  ;;  %v251_v29 = vsub.f32 %v979_v2, %v247_v15 }
 0x132   : > { %v221_v17 = vpop.xlane.xlu2 %220  ;;  %429 = vst.msk [vmem:[%s1010_s4 + $0x1] sm:$0x1] %vm427_vm2, %v360_v53 }
 0x133   : > { %v238_v18 = vrot.slane %v237_v16, 1  ;;  %v240_v19 = vrot.slane %v221_v17, 4  ;;  %v255_v31 = vmul.f32 %v251_v29, %v251_v29 }
 0x135   : > { %v241_v20 = vadd.f32 %v240_v19, %v221_v17  ;;  %v239_v21 = vadd.f32 %v238_v18, %v237_v16  ;;  %v261_v33 = vsel %vm209_vm0, %v255_v31, 0.0 }
 0x137   : > { %v242_v22 = vrot.slane %v241_v20, 2  ;;  %v248_v23 = vmul.f32 0.015625, %v239_v21 }
 0x139   : > { %v243_v24 = vadd.f32 %v242_v22, %v241_v20  ;;  %301 = vst.msk [vmem:[%s1010_s4 + $0x2] sm:$0x1] %vm298_vm1, %v248_v23  ;;  %v252_v34 = vsub.f32 %v971_v0, %v248_v23 }
 0x13a   : > { %430 = vst.msk [vmem:[%s1010_s4 + $0x2] sm:$0x1] %vm427_vm2, %v361_v37 }
 0x13b   : > { %v244_v25 = vrot.slane %v243_v24, 1  ;;  %v256_v36 = vmul.f32 %v252_v34, %v252_v34 }
 0x13d   : > { %v245_v26 = vadd.f32 %v244_v25, %v243_v24  ;;  %v264_v38 = vsel %vm209_vm0, %v256_v36, 0.0 }
 0x13f   : > { %v249_v27 = vmul.f32 0.015625, %v245_v26 }
 0x141   : > { %302 = vst.msk [vmem:[%s1010_s4 + $0x3] sm:$0x1] %vm298_vm1, %v249_v27  ;;  %v253_v35 = vsub.f32 %v981_v3, %v249_v27 }
 0x142   : > { %431 = vst.msk [vmem:[%s1010_s4 + $0x3] sm:$0x1] %vm427_vm2, %v362_v55 }
 0x143   : > { %v257_v37 = vmul.f32 %v253_v35, %v253_v35 }
 0x145   : > { %v267_v1 = vsel %vm209_vm0, %v257_v37, 0.0 }
 0x147   : > { %265 = vadd.xlane.f32.xlu1 %v264_v38 }
 0x14f   : > { %259 = vadd.xlane.f32.xlu0 %v258_v32  ;;  %262 = vadd.xlane.f32.xlu2 %v261_v33 }
 0x157   : > { %268 = vadd.xlane.f32.xlu0 %v267_v1 }
 0x177   : > { %v376_v2 = vpop.permute.xlu2 %375 }
 0x178   : > { %v387_v39 = vsel %vm209_vm0, %v376_v2, 0.0 }
 0x179   : > { %388 = vadd.xlane.f32.xlu2 %v387_v39 }
 0x180   : > { %v382_v40 = vpop.permute.xlu2 %381 }
 0x181   : > { %v396_v41 = vsel %vm209_vm0, %v382_v40, 0.0 }
 0x182   : > { %397 = vadd.xlane.f32.xlu2 %v396_v41 }
 0x18f   : > { %v380_v42 = vpop.permute.xlu1 %379 }
 0x190   : > { %v393_v0 = vsel %vm209_vm0, %v380_v42, 0.0 }
 0x191   : > { %394 = vadd.xlane.f32.xlu0 %v393_v0 }
 0x197   : > { %v378_v3 = vpop.permute.xlu0 %377 }
 0x198   : > { %v390_v43 = vsel %vm209_vm0, %v378_v3, 0.0 }
 0x199   : > { %391 = vadd.xlane.f32.xlu1 %v390_v43 }
 0x1ba   : > { %v266_v60 = vpop.xlane.xlu1 %265 }
 0x1bb   : > { %v282_v61 = vrot.slane %v266_v60, 4 }
 0x1bd   : > { %v283_v62 = vadd.f32 %v282_v61, %v266_v60 }
 0x1bf   : > { %v284_v63 = vrot.slane %v283_v62, 2 }
 0x1c1   : > { %v285_v4 = vadd.f32 %v284_v63, %v283_v62 }
 0x1c2   : > { %v260_v44 = vpop.xlane.xlu0 %259  ;;  %v263_v45 = vpop.xlane.xlu2 %262 }
 0x1c3   : > { %v270_v46 = vrot.slane %v260_v44, 4  ;;  %v276_v47 = vrot.slane %v263_v45, 4  ;;  %v286_v6 = vrot.slane %v285_v4, 1 }
 0x1c5   : > { %v271_v48 = vadd.f32 %v270_v46, %v260_v44  ;;  %v277_v49 = vadd.f32 %v276_v47, %v263_v45  ;;  %v287_v8 = vadd.f32 %v286_v6, %v285_v4  ;;  %v469_v44 = vld [vmem:[%s1010_s4] sm:$0x1] (%p944_p9)  ;;  %v471_v45 = vld [vmem:[%s1010_s4 + $0x1] sm:$0x1] (%p944_p9)  ;;  %v473_v46 = vld [vmem:[%s1010_s4 + $0x2] sm:$0x1] (%p944_p9) }
 0x1c6   : > { %470 = vst [vmem:[%s452_s17] sm:$0x1] (%p944_p9), %v469_v44  ;;  %v475_v47 = vld [vmem:[%s1010_s4 + $0x3] sm:$0x1] (%p944_p9) }
 0x1c7   : > { %v272_v50 = vrot.slane %v271_v48, 2  ;;  %v278_v51 = vrot.slane %v277_v49, 2  ;;  %v296_v10 = vmul.f32 0.015873017, %v287_v8  ;;  %472 = vst [vmem:[%s452_s17 + $0x2] sm:$0x1] (%p944_p9), %v471_v45 }
 0x1c8   : > { %474 = vst [vmem:[%s452_s17 + $0x4] sm:$0x1] (%p944_p9), %v473_v46 }
 0x1c9   : > { %v273_v52 = vadd.f32 %v272_v50, %v271_v48  ;;  %v279_v53 = vadd.f32 %v278_v51, %v277_v49  ;;  %305 = vst.msk [vmem:[%s1042_s5 + $0x2] sm:$0x1] %vm298_vm1, %v296_v10 }
 0x1ca   : > { %v269_v5 = vpop.xlane.xlu0 %268  ;;  %476 = vst [vmem:[%s452_s17 + $0x6] sm:$0x1] (%p944_p9), %v475_v47 }
 0x1cb   : > { %v274_v54 = vrot.slane %v273_v52, 1  ;;  %v280_v55 = vrot.slane %v279_v53, 1  ;;  %v288_v7 = vrot.slane %v269_v5, 4 }
 0x1cd   : > { %v275_v56 = vadd.f32 %v274_v54, %v273_v52  ;;  %v281_v57 = vadd.f32 %v280_v55, %v279_v53  ;;  %v289_v9 = vadd.f32 %v288_v7, %v269_v5 }
 0x1cf   : > { %v294_v58 = vmul.f32 0.015873017, %v275_v56  ;;  %v295_v59 = vmul.f32 0.015873017, %v281_v57  ;;  %v290_v11 = vrot.slane %v289_v9, 2 }
 0x1d1   : > { %303 = vst.msk [vmem:[%s1042_s5] sm:$0x1] %vm298_vm1, %v294_v58  ;;  %v291_v12 = vadd.f32 %v290_v11, %v289_v9 }
 0x1d2   : > { %304 = vst.msk [vmem:[%s1042_s5 + $0x1] sm:$0x1] %vm298_vm1, %v295_v59 }
 0x1d3   : > { %v292_v13 = vrot.slane %v291_v12, 1 }
 0x1d5   : > { %v293_v14 = vadd.f32 %v292_v13, %v291_v12 }
 0x1d7   : > { %v297_v15 = vmul.f32 0.015873017, %v293_v14 }
 0x1d9   : > { %306 = vst.msk [vmem:[%s1042_s5 + $0x3] sm:$0x1] %vm298_vm1, %v297_v15 }
 0x1ec   : > { %v389_v16 = vpop.xlane.xlu2 %388 }
 0x1ed   : > { %v399_v17 = vrot.slane %v389_v16, 4 }
 0x1ef   : > { %v400_v18 = vadd.f32 %v399_v17, %v389_v16 }
 0x1f1   : > { %v401_v19 = vrot.slane %v400_v18, 2 }
 0x1f3   : > { %v402_v20 = vadd.f32 %v401_v19, %v400_v18 }
 0x1f5   : > { %v403_v21 = vrot.slane %v402_v20, 1  ;;  %v398_v22 = vpop.xlane.xlu2 %397 }
 0x1f6   : > { %v417_v23 = vrot.slane %v398_v22, 4 }
 0x1f7   : > { %v404_v24 = vadd.f32 %v403_v21, %v402_v20 }
 0x1f8   : > { %v418_v25 = vadd.f32 %v417_v23, %v398_v22 }
 0x1f9   : > { %v423_v26 = vmul.f32 0.015873017, %v404_v24 }
 0x1fa   : > { %v419_v27 = vrot.slane %v418_v25, 2 }
 0x1fb   : > { %432 = vst.msk [vmem:[%s1042_s5] sm:$0x1] %vm427_vm2, %v423_v26 }
 0x1fc   : > { %v420_v28 = vadd.f32 %v419_v27, %v418_v25 }
 0x1fe   : > { %v421_v29 = vrot.slane %v420_v28, 1 }
 0x200   : > { %v422_v30 = vadd.f32 %v421_v29, %v420_v28 }
 0x202   : > { %v426_v31 = vmul.f32 0.015873017, %v422_v30 }
 0x204   : > { %435 = vst.msk [vmem:[%s1042_s5 + $0x3] sm:$0x1] %vm427_vm2, %v426_v31  ;;  %v395_v32 = vpop.xlane.xlu0 %394 }
 0x205   : > { %v411_v33 = vrot.slane %v395_v32, 4 }
 0x207   : > { %v412_v34 = vadd.f32 %v411_v33, %v395_v32 }
 0x209   : > { %v413_v35 = vrot.slane %v412_v34, 2 }
 0x20b   : > { %v414_v36 = vadd.f32 %v413_v35, %v412_v34 }
 0x20c   : > { %v392_v37 = vpop.xlane.xlu1 %391 }
 0x20d   : > { %v415_v38 = vrot.slane %v414_v36, 1  ;;  %v405_v1 = vrot.slane %v392_v37, 4 }
 0x20f   : > { %v416_v2 = vadd.f32 %v415_v38, %v414_v36  ;;  %v406_v39 = vadd.f32 %v405_v1, %v392_v37 }
 0x211   : > { %v425_v40 = vmul.f32 0.015873017, %v416_v2  ;;  %v407_v41 = vrot.slane %v406_v39, 2 }
 0x213   : > { %434 = vst.msk [vmem:[%s1042_s5 + $0x2] sm:$0x1] %vm427_vm2, %v425_v40  ;;  %v408_v42 = vadd.f32 %v407_v41, %v406_v39 }
 0x215   : > { %v409_v0 = vrot.slane %v408_v42, 1 }
 0x217   : > { %v410_v3 = vadd.f32 %v409_v0, %v408_v42  ;;  %446 = sbr.rel (!%p944_p9) target bundleno = 540 (0x21c), region = 32 }
 0x219   : > { %v424_v43 = vmul.f32 0.015873017, %v410_v3 }
 0x21b   : > { %433 = vst.msk [vmem:[%s1042_s5 + $0x1] sm:$0x1] %vm427_vm2, %v424_v43 }
 0x21c PF: > { %500 = sbr.rel (!%p944_p9) target bundleno = 548 (0x224), region = 66  ;;  %s680_s21 = sshll.u32 (%p944_p9), %s842_s13, 3  ;;  %v523_v48 = vld [vmem:[%s1042_s5] sm:$0x1] (%p944_p9)  ;;  %v527_v50 = vld [vmem:[%s1042_s5 + $0x2] sm:$0x1] (%p944_p9) }
 0x21d   : > { %s505_s24 = sadd.s32 (%p944_p9), %s838_s12, %s680_s21  ;;  %v529_v51 = vld [vmem:[%s1042_s5 + $0x3] sm:$0x1] (%p944_p9) }
 0x21e   : > { %s506_s28 = scalar_lea.vmem (%p944_p9), %s1108_s2, %s505_s24 }
 0x21f   : > { %524 = vst [vmem:[%s506_s28] sm:$0x1] (%p944_p9), %v523_v48 }
 0x220   : > { %528 = vst [vmem:[%s506_s28 + $0x4] sm:$0x1] (%p944_p9), %v527_v50 }
 0x221   : > { %530 = vst [vmem:[%s506_s28 + $0x6] sm:$0x1] %v529_v51 }
 0x222   : > { %v525_v49 = vld [vmem:[%s1042_s5 + $0x1] sm:$0x1] }
 0x223   : > { %526 = vst [vmem:[%s506_s28 + $0x2] sm:$0x1] %v525_v49 }
 0x224 PF: > { %s16_s16 = sadd.s32 1, %s854_s16   ;;  %s1112_s9 = smov %s830_s10 }
 0x225   : > { %p13_p2 = scmp.ge.s32.totalorder %s16_s16, 6   ;;  %s1113_s10 = smov %s834_s11 }
 0x226   : > { %s1114_s11 = smov %s952_s29  ;;  %s1115_s12 = smov %s846_s14 }
 0x227   : > { %s1116_s13 = smov %s850_s15  ;;  %s1117_s14 = smov %s1120_s18 }
 0x228   : > { %s1118_s15 = smov %s1124_s19  ;;  %15 = sbr.rel (!%p13_p2) target bundleno = 5 (0x5), region = 144 }
 0x22d   :  { %571 = vsyncpa [#allocation3], 1 }
 0x22e   :  { %573 = vsyncpa [#allocation3 + $0x1], 1 }

</bundles_post_ra>
